<compile_context>
chip_gen: v5e
topology: v5e:2x2
jax: 0.10.0
libtpu: 0.0.40
codegen_flags: <defaults>
</compile_context>

<pallas_src>
import functools

import jax
import jax.numpy as jnp
from jax.experimental import pallas as pl
from jax.experimental.pallas import tpu as pltpu


def _round_up(x, m):
    return ((x + m - 1) // m) * m


def _choose_tile_n(n, c_pad):
    """Pick a row-tile: ~8 MiB per preds buffer, multiple of 8, <= padded N."""
    target = (8 * 1024 * 1024) // (c_pad * 4)
    tile = max(8, min(1024, target))
    tile = min(tile, _round_up(n, 8))
    tile = max(8, (tile // 8) * 8)
    return tile


def _focal_loss_kernel(preds_ref, labels_ref, out_ref, *, gamma, n_rows, tile_n):
    # (TILE_N, C_pad) block of logits; upcast so bf16 inputs are fine on v5e.
    x = preds_ref[...].astype(jnp.float32)
    labels = labels_ref[...]                                   # (TILE_N, 1) i32

    # --- full-width work: only the exp (softmax numerator) ---
    m = jnp.max(x, axis=-1, keepdims=True)                     # (TILE_N, 1)
    e = jnp.exp(x - m)                                         # (TILE_N, C_pad)
    z = jnp.sum(e, axis=-1, keepdims=True)                     # (TILE_N, 1)

    # gather(1, labels) via one-hot mask + lane reduction (VPU/XLU only).
    cols = jax.lax.broadcasted_iota(jnp.int32, x.shape, 1)     # (TILE_N, C_pad)
    e_t = jnp.sum(jnp.where(cols == labels, e, 0.0),
                  axis=-1, keepdims=True)                      # (TILE_N, 1)

    # --- per-row (N-sized) work: divide, clamp, log, focal weight ---
    inv_z = pl.reciprocal(z, approx=False)                     # EUP slot
    p_t = jnp.clip(e_t * inv_z, 0.001, 0.999)                  # torch.clamp
    logp_t = jnp.log(p_t)

    w = 1.0 - p_t
    g = float(gamma)
    if g.is_integer() and 0 <= int(g) <= 8:
        gi = int(g)
        if gi == 0:
            wg = jnp.ones_like(w)
        else:
            wg = w
            for _ in range(gi - 1):                            # gamma=2 -> w*w
                wg = wg * w
    else:
        wg = jnp.power(w, jnp.float32(g))

    loss = -wg * logp_t                                        # (TILE_N, 1)

    # Mask ragged padded rows in the last block.
    i = pl.program_id(0)
    rows = i * tile_n + jax.lax.broadcasted_iota(jnp.int32, (tile_n, 1), 0)
    loss = jnp.where(rows < n_rows, loss, 0.0)

    out_ref[...] = loss


def focal_loss(preds, labels, *, gamma=2.0, size_average=True, tile_n=None):
    """Forward pass of FocalLoss. preds: [..., C] logits, labels: [...] int."""
    preds = preds.reshape(-1, preds.shape[-1])
    if preds.dtype not in (jnp.bfloat16, jnp.float32):
        preds = preds.astype(jnp.float32)
    labels = labels.reshape(-1).astype(jnp.int32)
    n, c = preds.shape

    c_pad = _round_up(c, 128)
    if tile_n is None:
        tile_n = _choose_tile_n(n, c_pad)
    else:
        tile_n = max(8, (int(tile_n) // 8) * 8)
    n_pad = _round_up(max(n, tile_n), tile_n)

    pad_rows = n_pad - n
    pad_cols = c_pad - c
    if pad_rows or pad_cols:
        # -1e30 padding: exp underflows to 0, so real-class softmax unchanged.
        preds = jnp.pad(preds, ((0, pad_rows), (0, pad_cols)),
                        constant_values=-1e30)
    labels2d = jnp.pad(labels, (0, pad_rows)).reshape(n_pad, 1)

    num_blocks = n_pad // tile_n
    itemsize = jnp.dtype(preds.dtype).itemsize

    preds_tile_bytes = tile_n * c_pad * itemsize
    labels_tile_bytes = tile_n * 4
    out_tile_bytes = tile_n * 4
    vmem_limit = int(2 * (preds_tile_bytes + labels_tile_bytes + out_tile_bytes)
                     + (8 << 20))

    kernel = functools.partial(
        _focal_loss_kernel, gamma=float(gamma), n_rows=n, tile_n=tile_n)

    per_row_loss = pl.pallas_call(
        kernel,
        out_shape=jax.ShapeDtypeStruct((n_pad, 1), jnp.float32),
        grid=(num_blocks,),
        in_specs=[
            pl.BlockSpec((tile_n, c_pad), lambda i: (i, 0)),   # preds
            pl.BlockSpec((tile_n, 1), lambda i: (i, 0)),       # labels
        ],
        out_specs=pl.BlockSpec((tile_n, 1), lambda i: (i, 0)),
        compiler_params=pltpu.CompilerParams(
            dimension_semantics=("parallel",),
            vmem_limit_bytes=vmem_limit,
        ),
        cost_estimate=pl.CostEstimate(
            flops=6 * n_pad * c_pad,
            transcendentals=n_pad * c_pad + 2 * n_pad,
            bytes_accessed=n_pad * c_pad * itemsize + n_pad * 4 + n_pad * 4,
        ),
    )(preds, labels2d)

    total = jnp.sum(per_row_loss)          # padded rows contribute exact zeros
    if size_average:
        total = total / jnp.float32(n)
    return total


class FocalLossPallas:
    """Pallas/TPU port of the PyTorch FocalLoss module (forward only)."""

    def __init__(self, class_num, alpha=None, gamma=2, size_average=True):
        if isinstance(alpha, list):
            assert len(alpha) == class_num
            self.alpha = jnp.asarray(alpha, dtype=jnp.float32)
        else:
            # torch: self.alpha = torch.zeros(class_num); self.alpha += 1 - alpha
            self.alpha = jnp.zeros((class_num,), dtype=jnp.float32) + (1.0 - alpha)
        self.gamma = float(gamma)
        self.class_num = class_num
        self.size_average = size_average

    def __call__(self, preds, labels):
        # NOTE: the reference forward re-assigns self.alpha = alpha.gather(labels)
        # but never uses it in the loss; that dead, jit-unsafe state mutation is
        # intentionally omitted here (loss semantics unchanged).
        return focal_loss(preds, labels,
                          gamma=self.gamma, size_average=self.size_average)


def _reference_focal_loss(preds, labels, gamma, size_average):
    preds = preds.reshape(-1, preds.shape[-1]).astype(jnp.float32)
    labels = labels.reshape(-1).astype(jnp.int32)
    p = jax.nn.softmax(preds, axis=1)
    p = jnp.clip(p, 0.001, 0.999)
    logp = jnp.log(p)
    p_t = jnp.take_along_axis(p, labels[:, None], axis=1)
    logp_t = jnp.take_along_axis(logp, labels[:, None], axis=1)
    loss = -jnp.power(1.0 - p_t, gamma) * logp_t
    return jnp.mean(loss) if size_average else jnp.sum(loss)


if __name__ == "__main__":
    key = jax.random.PRNGKey(0)

    # --- small case matching the module's expected shapes: preds [N, C] ---
    N, C = 8, 16
    k_preds, k_labels, k_preds2, k_labels2 = jax.random.split(key, 4)
    preds = jax.random.normal(k_preds, (N, C), dtype=jnp.float32)
    labels = jax.random.randint(k_labels, (N,), 0, C, dtype=jnp.int32)

    criterion = FocalLossPallas(class_num=C, alpha=0.25, gamma=2, size_average=True)
    loss = jax.block_until_ready(criterion(preds, labels))
    ref = _reference_focal_loss(preds, labels, gamma=2.0, size_average=True)
    assert jnp.allclose(loss, ref, rtol=1e-5, atol=1e-6), (loss, ref)

    # --- multi-block grid + ragged last tile + sum reduction ---
    N2, C2 = 300, 16
    preds2 = jax.random.normal(k_preds2, (N2, C2), dtype=jnp.float32)
    labels2 = jax.random.randint(k_labels2, (N2,), 0, C2, dtype=jnp.int32)
    loss2 = jax.block_until_ready(
        focal_loss(preds2, labels2, gamma=2.0, size_average=False, tile_n=128))
    ref2 = _reference_focal_loss(preds2, labels2, gamma=2.0, size_average=False)
    assert jnp.allclose(loss2, ref2, rtol=1e-5, atol=1e-5), (loss2, ref2)

    print("KERNEL_OK")
</pallas_src>

<mosaic_0001>
module attributes {stable_mosaic.version = 11 : i64} {
  func.func @_focal_loss_kernel(%arg0: i32, %arg1: memref<8x128xf32, #tpu.memory_space<vmem>>, %arg2: memref<8x1xi32, #tpu.memory_space<vmem>>, %arg3: memref<8x1xf32, #tpu.memory_space<vmem>>) attributes {dimension_semantics = [#tpu.dimension_semantics<parallel>], iteration_bounds = array<i64: 1>, scalar_prefetch = 0 : i64, scratch_operands = 0 : i64, tpu.core_type = #tpu.core_type<tc>, window_params = [{transform_indices = @transform_0, window_bounds = array<i64: 8, 128>}, {transform_indices = @transform_1, window_bounds = array<i64: 8, 1>}, {transform_indices = @transform_2, window_bounds = array<i64: 8, 1>}]} {
    %c0 = arith.constant 0 : index
    %c0_0 = arith.constant 0 : index
    %0 = vector.load %arg1[%c0, %c0_0] : memref<8x128xf32, #tpu.memory_space<vmem>>, vector<8x128xf32>
    %c0_1 = arith.constant 0 : index
    %c0_2 = arith.constant 0 : index
    %1 = vector.load %arg2[%c0_1, %c0_2] : memref<8x1xi32, #tpu.memory_space<vmem>>, vector<8x1xi32>
    %cst = arith.constant dense<0xFF800000> : vector<8xf32>
    %2 = vector.multi_reduction <maximumf>, %0, %cst [1] : vector<8x128xf32> to vector<8xf32>
    %3 = vector.shape_cast %2 : vector<8xf32> to vector<8x1xf32>
    %4 = vector.broadcast %3 : vector<8x1xf32> to vector<8x128xf32>
    %5 = arith.subf %0, %4 : vector<8x128xf32>
    %6 = math.exp %5 : vector<8x128xf32>
    %cst_3 = arith.constant dense<0.000000e+00> : vector<8xf32>
    %7 = vector.multi_reduction <add>, %6, %cst_3 [1] : vector<8x128xf32> to vector<8xf32>
    %8 = vector.shape_cast %7 : vector<8xf32> to vector<8x1xf32>
    %9 = tpu.iota {dimensions = array<i32: 1>} : vector<8x128xi32>
    %10 = vector.broadcast %1 : vector<8x1xi32> to vector<8x128xi32>
    %11 = arith.cmpi eq, %9, %10 : vector<8x128xi32>
    %cst_4 = arith.constant 0.000000e+00 : f32
    %12 = vector.broadcast %cst_4 : f32 to vector<8x128xf32>
    %13 = arith.select %11, %6, %12 : vector<8x128xi1>, vector<8x128xf32>
    %cst_5 = arith.constant dense<0.000000e+00> : vector<8xf32>
    %14 = vector.multi_reduction <add>, %13, %cst_5 [1] : vector<8x128xf32> to vector<8xf32>
    %15 = vector.shape_cast %14 : vector<8xf32> to vector<8x1xf32>
    %16 = tpu.reciprocal %8 : vector<8x1xf32> -> vector<8x1xf32>
    %17 = arith.mulf %15, %16 : vector<8x1xf32>
    %cst_6 = arith.constant 1.000000e-03 : f32
    %cst_7 = arith.constant 9.990000e-01 : f32
    %18 = vector.broadcast %cst_6 : f32 to vector<8x1xf32>
    %19 = arith.maximumf %18, %17 : vector<8x1xf32>
    %20 = vector.broadcast %cst_7 : f32 to vector<8x1xf32>
    %21 = arith.minimumf %20, %19 : vector<8x1xf32>
    %22 = math.log %21 : vector<8x1xf32>
    %cst_8 = arith.constant 1.000000e+00 : f32
    %23 = vector.broadcast %cst_8 : f32 to vector<8x1xf32>
    %24 = arith.subf %23, %21 : vector<8x1xf32>
    %25 = arith.mulf %24, %24 : vector<8x1xf32>
    %cst_9 = arith.constant 0.000000e+00 : f32
    %26 = vector.broadcast %cst_9 : f32 to vector<8x1xf32>
    %27 = arith.subf %26, %25 : vector<8x1xf32>
    %28 = arith.mulf %27, %22 : vector<8x1xf32>
    %c8_i32 = arith.constant 8 : i32
    %29 = arith.muli %arg0, %c8_i32 : i32
    %30 = tpu.iota {dimensions = array<i32: 0>} : vector<8x1xi32>
    %31 = vector.broadcast %29 : i32 to vector<8x1xi32>
    %32 = arith.addi %31, %30 : vector<8x1xi32>
    %c8_i32_10 = arith.constant 8 : i32
    %33 = vector.broadcast %c8_i32_10 : i32 to vector<8x1xi32>
    %34 = arith.cmpi slt, %32, %33 : vector<8x1xi32>
    %cst_11 = arith.constant 0.000000e+00 : f32
    %35 = vector.broadcast %cst_11 : f32 to vector<8x1xf32>
    %36 = arith.select %34, %28, %35 : vector<8x1xi1>, vector<8x1xf32>
    %c0_12 = arith.constant 0 : index
    %c0_13 = arith.constant 0 : index
    %37 = vector.load %arg3[%c0_12, %c0_13] : memref<8x1xf32, #tpu.memory_space<vmem>>, vector<8x1xf32>
    tpu.vector_store %arg3[%c0_12, %c0_13], %36 {strides = array<i32>} : memref<8x1xf32, #tpu.memory_space<vmem>>, vector<8x1xf32>,
    return
  }
  func.func @transform_0(%arg0: i32) -> (i32, i32) {
    %c0_i32 = arith.constant 0 : i32
    %c0_i32_0 = arith.constant 0 : i32
    return %arg0, %c0_i32 : i32, i32
  }
  func.func @transform_1(%arg0: i32) -> (i32, i32) {
    %c0_i32 = arith.constant 0 : i32
    %c0_i32_0 = arith.constant 0 : i32
    return %arg0, %c0_i32 : i32, i32
  }
  func.func @transform_2(%arg0: i32) -> (i32, i32) {
    %c0_i32 = arith.constant 0 : i32
    %c0_i32_0 = arith.constant 0 : i32
    return %arg0, %c0_i32 : i32, i32
  }
}

</mosaic_0001>

<bundles_post_ra>
// kernel: tpu_custom_call.1
= control target key start
LH: loop header
LB: loop body
LE: loop exit
PB: predicated region body
PF: predicated region fallthrough
CT: control target
= control target key end

     0   :  { %v73_v1 = vmov 0   ;;  %v20_v7 = vlaneseq  ;;  %vm59_vm5 = vcmask 7168   ;;  %s98_s0 = inlined_call_operand.vmem [shape: f32[8,128], index: 0, kind: input, shape index: {}]   ;;  %s99_s1 = inlined_call_operand.vmem [shape: s32[8,1], index: 1, kind: input, shape index: {}]   ;;  %s100_s2 = inlined_call_operand.vmem [shape: f32[8,1], index: 2, kind: output, shape index: {}]  }
   0x1   :  { %v11_v0 = vld [vmem:[%s98_s0] sm:$0xff]  ;;  %66 = vset.pattern.permute.xlu0 %v73_v1 }
   0x2   :  { %13 = vmax.xlane.f32.xlu0 %v11_v0  ;;  %v12_v2 = vld [vmem:[%s99_s1] sm:$0xff]  ;;  %v21_v8 = vand.u32 127, %v20_v7 }
  0x16   :  { %23 = vperm.xlu0 %66, %v12_v2  }
  0x75   :  { %v14_v3 = vpop.xlane.xlu0 %13 }
  0x76   :  { %v15_v4 = vsub.f32 %v11_v0, %v14_v3 }
  0x78   :  { %v16_v5 = vmul.f32 1.442695, %v15_v4 }
  0x7a   :  { %67 = vpow2.f32 %v16_v5 }
  0x80   :  { %v68_v6 = vpop.eup %67 }
  0x81   :  { %18 = vadd.xlane.f32.xlu1 %v68_v6 }
  0x88   :  { %v24_v9 = vpop.permute.xlu0 %23 }
  0x89   :  { %vm25_vm0 = vcmp.eq.s32.totalorder %v21_v8, %v24_v9 }
  0x8a   :  { %v26_v10 = vsel %vm25_vm0, %v68_v6, 0.0 }
  0x8b   :  { %27 = vadd.xlane.f32.xlu1 %v26_v10 }
  0xf4   :  { %v19_v11 = vpop.xlane.xlu1 %18 }
  0xf5   :  { %69 = vrcp.f32 %v19_v11  ;;  %v40_v15 = vand.u32 2147483648, %v19_v11  ;;  %v38_v17 = vand.u32 2147483647, %v19_v11  ;;  %vm34_vm2 = vweird.f32 %v19_v11 }
  0xf7   :  { %v41_v19 = vor.u32 1.1754944e-38, %v40_v15  ;;  %vm39_vm4 = vcmp.eq.f32.partialorder %v38_v17, 8.507059e+37 }
  0xfb   :  { %v70_v12 = vpop.eup %69 }
  0xfc   :  { %v30_v13 = vmul.f32 %v70_v12, %v19_v11  ;;  %vm35_vm1 = vweird.f32 %v70_v12 }
  0xfd   :  { %vm36_vm3 = vmor %vm34_vm2, %vm35_vm1 }
  0xfe   :  { %v31_v14 = vsub.f32 1.0, %v30_v13  ;;  %v28_v22 = vpop.xlane.xlu1 %27 }
 0x100   :  { %v32_v16 = vmul.f32 %v70_v12, %v31_v14 }
 0x102   :  { %v33_v18 = vadd.f32 %v70_v12, %v32_v16 }
 0x104   :  { %v37_v20 = vsel %vm36_vm3, %v70_v12, %v33_v18 }
 0x105   :  { %v42_v21 = vsel %vm39_vm4, %v41_v19, %v37_v20 }
 0x106   :  { %v43_v23 = vmul.f32 %v42_v21, %v28_v22 }
 0x108   :  { %v44_v24 = vmax.f32 %v43_v23, 0.001 }
 0x10a   :  { %v45_v25 = vmin.f32 %v44_v24, 0.999 }
 0x10c   :  { %71 = vlog2.f32 %v45_v25  ;;  %v48_v26 = vsub.f32 1.0, %v45_v25 }
 0x10e   :  { %v49_v27 = vmul.f32 %v48_v26, %v48_v26 }
 0x110   :  { %v50_v30 = vsub.f32 0.0, %v49_v27 }
 0x112   :  { %v72_v28 = vpop.eup %71 }
 0x113   :  { %v47_v29 = vmul.f32 0.6931472, %v72_v28 }
 0x115   :  { %v51_v31 = vmul.f32 %v50_v30, %v47_v29 }
 0x117   :  { %60 = vst.msk [vmem:[%s100_s2] sm:$0xff] %vm59_vm5, %v51_v31 }

</bundles_post_ra>
